<compile_context>
chip_gen: v5e
topology: v5e:2x2
jax: 0.10.0
libtpu: 0.0.40
codegen_flags: <defaults>
</compile_context>

<pallas_src>
import jax
import jax.numpy as jnp
from jax.experimental import pallas as pl
from jax.experimental.pallas import tpu as pltpu

BN_EPS = 1e-5


def _round_up(n: int, m: int) -> int:
    return -(-n // m) * m


def _build_kernel(num_extra_layers: int):
    """Fused forward on one batch tile:
         cat_emb = tanh(xc @ embT + emb_b)            # embT has zero rows for numeric cols
         h = relu(xc @ w1T + cat_emb @ w1cT + b1)     # concat-free, BN folded
         h = relu(h @ wT + b)   (per extra layer)     # BN folded, Dropout = identity (eval)
         out = h @ finT + fin_b                       # stored un-padded (real `outputs` lanes)
    """

    def kernel(*refs):
        it = iter(refs[:-1])
        out_ref = refs[-1]

        xc = next(it)[...]        # (tile_b, num_numeric + cat)
        emb_wT = next(it)[...]    # (num_numeric + cat, cat), numeric rows zero
        emb_b = next(it)[...]
        w1T = next(it)[...]       # (num_numeric + cat, n1), cat rows zero
        w1cT = next(it)[...]      # (cat, n1)
        b1 = next(it)[...]

        # Embedding branch: Linear(categoricalShape, categoricalShape) + Tanh.
        cat_emb = jnp.tanh(
            jnp.dot(xc, emb_wT, preferred_element_type=jnp.float32) + emb_b
        )

        # torch.cat([x, cat_emb], 1) @ W1.T == xc @ W1n_lifted.T + cat_emb @ W1c.T
        h = (
            jnp.dot(xc, w1T, preferred_element_type=jnp.float32)
            + jnp.dot(cat_emb, w1cT, preferred_element_type=jnp.float32)
            + b1
        )
        h = jnp.maximum(h, 0.0)  # BN folded; Dropout(0.4) identity in eval mode

        for _ in range(num_extra_layers):
            wT = next(it)[...]
            b = next(it)[...]
            h = jnp.maximum(
                jnp.dot(h, wT, preferred_element_type=jnp.float32) + b, 0.0
            )

        # Final Linear, stored at its real width (no lane padding in HBM).
        wT = next(it)[...]
        b = next(it)[...]
        out_ref[...] = jnp.dot(h, wT, preferred_element_type=jnp.float32) + b

    return kernel


def _fold_bn(w, b, gamma, beta, run_mean, run_var):
    """Fold eval-mode BatchNorm1d into the preceding Linear (host-side, f32)."""
    scale = gamma * jax.lax.rsqrt(run_var + BN_EPS)   # (N,)
    w_f = w * scale[:, None]                          # (N, in)
    b_f = (b - run_mean) * scale + beta               # (N,)
    return w_f, b_f


def simple_classifier_forward(x, cat_x, params, *, tile_b=2048):
    """Host-side BN folding / concat elimination, then one batch-tiled pallas_call."""
    batch, num_numeric = x.shape
    cat_shape = cat_x.shape[1]
    tot_in = num_numeric + cat_shape
    hidden = params["hidden"]
    fin_w, fin_b = params["final"]
    outputs = fin_w.shape[0]

    assert hidden[0]["w"].shape[1] == tot_in, (
        "inputsList[0] must equal x.shape[1] + categoricalShape "
        "(concat order is [x, cat_emb])"
    )

    # ---- host-side algebra (tiny, fully dense) ----
    emb_w, emb_b = params["emb"]
    # Lift the embedding Linear onto the concatenated input: numeric rows are zero.
    emb_wT = (
        jnp.zeros((tot_in, cat_shape), jnp.float32)
        .at[num_numeric:, :]
        .set(emb_w.T.astype(jnp.float32))
    )

    w1, b1 = _fold_bn(
        hidden[0]["w"], hidden[0]["b"], hidden[0]["gamma"],
        hidden[0]["beta"], hidden[0]["run_mean"], hidden[0]["run_var"],
    )
    n1 = w1.shape[0]
    # Numeric half of W1 lifted onto the concatenated input: cat-emb rows are zero.
    w1T = (
        jnp.zeros((tot_in, n1), jnp.float32)
        .at[:num_numeric, :]
        .set(w1[:, :num_numeric].T)
    )
    w1cT = w1[:, num_numeric:].T  # applied to tanh(embedding)

    extra = []
    for layer in hidden[1:]:
        wf, bf = _fold_bn(
            layer["w"], layer["b"], layer["gamma"],
            layer["beta"], layer["run_mean"], layer["run_var"],
        )
        extra += [wf.T, bf.reshape(1, -1)]

    fin_wT = fin_w.T.astype(jnp.float32)               # (n_last, outputs), un-padded
    fin_bp = fin_b.reshape(1, -1).astype(jnp.float32)  # (1, outputs)

    # Single concatenated input stream (one DMA per grid step instead of two).
    xc = jnp.concatenate([x.astype(jnp.float32), cat_x.astype(jnp.float32)], axis=1)

    # ---- batch tiling: no host padding; Pallas masks the ragged edge block ----
    tile_b = int(tile_b)
    if batch <= tile_b:
        tile_b = batch                 # one block == full batch (full-dim block is legal)
    else:
        tile_b = _round_up(tile_b, 8)
    # v7x has 2 TensorCores: keep >= 2 grid programs when tiles stay large enough.
    half = _round_up(-(-batch // 2), 8)
    if tile_b >= batch and half >= 256:
        tile_b = half
    grid = (pl.cdiv(batch, tile_b),)

    weights = [
        emb_wT, jnp.reshape(emb_b, (1, -1)).astype(jnp.float32),
        w1T, w1cT, b1.reshape(1, -1),
    ] + extra + [fin_wT, fin_bp]

    in_specs = [pl.BlockSpec((tile_b, tot_in), lambda i: (i, 0))]
    # Constant (0, 0) index maps: weight blocks stay VMEM-resident; Pallas skips
    # the re-DMA when the block index is unchanged between grid steps.
    in_specs += [pl.BlockSpec(w.shape, lambda i: (0, 0)) for w in weights]
    out_spec = pl.BlockSpec((tile_b, outputs), lambda i: (i, 0))

    # VMEM budget: ~a dozen lane-padded f32 blocks of height tile_b
    # (double-buffered input/output + live intermediates). 32 MiB floor is safe
    # on v5e/v6e (128 MiB physical) and within v7x's 64 MiB physical VMEM.
    widths = [tot_in, cat_shape, outputs] + [l["w"].shape[0] for l in hidden]
    max_pad = max(_round_up(w, 128) for w in widths)
    vmem_limit = int(min(max(12 * tile_b * max_pad * 4, 32 << 20), 64 << 20))

    kernel = _build_kernel(len(hidden) - 1)

    return pl.pallas_call(
        kernel,
        out_shape=jax.ShapeDtypeStruct((batch, outputs), jnp.float32),
        grid=grid,
        in_specs=in_specs,
        out_specs=out_spec,
        compiler_params=pltpu.CompilerParams(
            dimension_semantics=("parallel",),
            vmem_limit_bytes=vmem_limit,
        ),
    )(xc, *weights)


def _linear_init(key, out_f, in_f):
    # PyTorch nn.Linear default: U(-1/sqrt(in), 1/sqrt(in)) for weight and bias.
    kw, kb = jax.random.split(key)
    bound = 1.0 / jnp.sqrt(float(in_f))
    w = jax.random.uniform(kw, (out_f, in_f), jnp.float32, -bound, bound)
    b = jax.random.uniform(kb, (out_f,), jnp.float32, -bound, bound)
    return w, b


def init_params(key, categorical_shape, inputs_list, neurons_list, outputs):
    keys = jax.random.split(key, 2 + 2 * len(inputs_list))
    params = {}
    params["emb"] = _linear_init(keys[0], categorical_shape, categorical_shape)

    hidden = []
    for i, (n_in, n_out) in enumerate(zip(inputs_list, neurons_list)):
        w, b = _linear_init(keys[1 + i], n_out, n_in)
        kbn = keys[1 + len(inputs_list) + i]
        k1, k2, k3, k4 = jax.random.split(kbn, 4)
        hidden.append(
            dict(
                w=w,
                b=b,
                gamma=1.0 + 0.1 * jax.random.normal(k1, (n_out,), jnp.float32),
                beta=0.1 * jax.random.normal(k2, (n_out,), jnp.float32),
                run_mean=0.1 * jax.random.normal(k3, (n_out,), jnp.float32),
                run_var=jnp.abs(jax.random.normal(k4, (n_out,), jnp.float32)) + 0.5,
            )
        )
    params["hidden"] = hidden
    params["final"] = _linear_init(keys[-1], outputs, neurons_list[-1])
    return params


def reference_forward(x, cat_x, params):
    """Pure-JAX reference (same eval-mode semantics, un-folded) for sanity checking."""
    emb_w, emb_b = params["emb"]
    cat_emb = jnp.tanh(cat_x @ emb_w.T + emb_b)
    h = jnp.concatenate([x, cat_emb], axis=1)
    for layer in params["hidden"]:
        h = h @ layer["w"].T + layer["b"]
        h = (h - layer["run_mean"]) * jax.lax.rsqrt(layer["run_var"] + BN_EPS)
        h = h * layer["gamma"] + layer["beta"]
        h = jnp.maximum(h, 0.0)
    fw, fb = params["final"]
    return h @ fw.T + fb


if __name__ == "__main__":
    # Shapes consistent with the module's forward:
    # x: [B, num_numeric], cat_x: [B, categoricalShape],
    # inputsList[0] == num_numeric + categoricalShape.
    batch = 8
    num_numeric = 24
    categorical_shape = 8
    inputs_list = [32, 64]
    neurons_list = [64, 32]
    outputs = 4

    key = jax.random.PRNGKey(0)
    kx, kc, kp = jax.random.split(key, 3)
    x = jax.random.normal(kx, (batch, num_numeric), jnp.float32)
    cat_x = jax.random.normal(kc, (batch, categorical_shape), jnp.float32)
    params = init_params(kp, categorical_shape, inputs_list, neurons_list, outputs)

    out = simple_classifier_forward(x, cat_x, params)
    out = jax.block_until_ready(out)

    ref = reference_forward(x, cat_x, params)
    assert out.shape == (batch, outputs)
    assert jnp.allclose(out, ref, atol=1e-3, rtol=1e-3), "mismatch vs JAX reference"

    print("KERNEL_OK")
</pallas_src>

<mosaic_0001>
module attributes {stable_mosaic.version = 11 : i64} {
  func.func @kernel(%arg0: i32, %arg1: memref<8x32xf32, #tpu.memory_space<vmem>>, %arg2: memref<32x8xf32, #tpu.memory_space<vmem>>, %arg3: memref<1x8xf32, #tpu.memory_space<vmem>>, %arg4: memref<32x64xf32, #tpu.memory_space<vmem>>, %arg5: memref<8x64xf32, #tpu.memory_space<vmem>>, %arg6: memref<1x64xf32, #tpu.memory_space<vmem>>, %arg7: memref<64x32xf32, #tpu.memory_space<vmem>>, %arg8: memref<1x32xf32, #tpu.memory_space<vmem>>, %arg9: memref<32x4xf32, #tpu.memory_space<vmem>>, %arg10: memref<1x4xf32, #tpu.memory_space<vmem>>, %arg11: memref<8x4xf32, #tpu.memory_space<vmem>>) attributes {dimension_semantics = [#tpu.dimension_semantics<parallel>], iteration_bounds = array<i64: 1>, scalar_prefetch = 0 : i64, scratch_operands = 0 : i64, tpu.core_type = #tpu.core_type<tc>, window_params = [{transform_indices = @transform_0, window_bounds = array<i64: 8, 32>}, {pipeline_mode = #tpu.pipeline_mode<synchronous>, transform_indices = @transform_1, window_bounds = array<i64: 32, 8>}, {pipeline_mode = #tpu.pipeline_mode<synchronous>, transform_indices = @transform_2, window_bounds = array<i64: 1, 8>}, {pipeline_mode = #tpu.pipeline_mode<synchronous>, transform_indices = @transform_3, window_bounds = array<i64: 32, 64>}, {pipeline_mode = #tpu.pipeline_mode<synchronous>, transform_indices = @transform_4, window_bounds = array<i64: 8, 64>}, {pipeline_mode = #tpu.pipeline_mode<synchronous>, transform_indices = @transform_5, window_bounds = array<i64: 1, 64>}, {pipeline_mode = #tpu.pipeline_mode<synchronous>, transform_indices = @transform_6, window_bounds = array<i64: 64, 32>}, {pipeline_mode = #tpu.pipeline_mode<synchronous>, transform_indices = @transform_7, window_bounds = array<i64: 1, 32>}, {pipeline_mode = #tpu.pipeline_mode<synchronous>, transform_indices = @transform_8, window_bounds = array<i64: 32, 4>}, {pipeline_mode = #tpu.pipeline_mode<synchronous>, transform_indices = @transform_9, window_bounds = array<i64: 1, 4>}, {transform_indices = @transform_10, window_bounds = array<i64: 8, 4>}]} {
    %c0 = arith.constant 0 : index
    %c0_0 = arith.constant 0 : index
    %0 = vector.load %arg1[%c0, %c0_0] : memref<8x32xf32, #tpu.memory_space<vmem>>, vector<8x32xf32>
    %c0_1 = arith.constant 0 : index
    %c0_2 = arith.constant 0 : index
    %1 = vector.load %arg2[%c0_1, %c0_2] : memref<32x8xf32, #tpu.memory_space<vmem>>, vector<32x8xf32>
    %c0_3 = arith.constant 0 : index
    %c0_4 = arith.constant 0 : index
    %2 = vector.load %arg3[%c0_3, %c0_4] : memref<1x8xf32, #tpu.memory_space<vmem>>, vector<1x8xf32>
    %c0_5 = arith.constant 0 : index
    %c0_6 = arith.constant 0 : index
    %3 = vector.load %arg4[%c0_5, %c0_6] : memref<32x64xf32, #tpu.memory_space<vmem>>, vector<32x64xf32>
    %c0_7 = arith.constant 0 : index
    %c0_8 = arith.constant 0 : index
    %4 = vector.load %arg5[%c0_7, %c0_8] : memref<8x64xf32, #tpu.memory_space<vmem>>, vector<8x64xf32>
    %c0_9 = arith.constant 0 : index
    %c0_10 = arith.constant 0 : index
    %5 = vector.load %arg6[%c0_9, %c0_10] : memref<1x64xf32, #tpu.memory_space<vmem>>, vector<1x64xf32>
    %cst = arith.constant dense<0.000000e+00> : vector<8x8xf32>
    %6 = tpu.matmul %0, %1, %cst {dimension_numbers = #tpu.dot_dimension_numbers<[1], [0], [0], [1], [0, 0, 1, 1], [], []>} : vector<8x32xf32>, vector<32x8xf32>, vector<8x8xf32> -> vector<8x8xf32>
    %7 = vector.broadcast %2 : vector<1x8xf32> to vector<8x8xf32>
    %8 = arith.addf %6, %7 : vector<8x8xf32>
    %9 = math.tanh %8 : vector<8x8xf32>
    %cst_11 = arith.constant dense<0.000000e+00> : vector<8x64xf32>
    %10 = tpu.matmul %0, %3, %cst_11 {dimension_numbers = #tpu.dot_dimension_numbers<[1], [0], [0], [1], [0, 0, 1, 1], [], []>} : vector<8x32xf32>, vector<32x64xf32>, vector<8x64xf32> -> vector<8x64xf32>
    %cst_12 = arith.constant dense<0.000000e+00> : vector<8x64xf32>
    %11 = tpu.matmul %9, %4, %cst_12 {dimension_numbers = #tpu.dot_dimension_numbers<[1], [0], [0], [1], [0, 0, 1, 1], [], []>} : vector<8x8xf32>, vector<8x64xf32>, vector<8x64xf32> -> vector<8x64xf32>
    %12 = arith.addf %10, %11 : vector<8x64xf32>
    %13 = vector.broadcast %5 : vector<1x64xf32> to vector<8x64xf32>
    %14 = arith.addf %12, %13 : vector<8x64xf32>
    %cst_13 = arith.constant 0.000000e+00 : f32
    %15 = vector.broadcast %cst_13 : f32 to vector<8x64xf32>
    %16 = arith.maximumf %14, %15 : vector<8x64xf32>
    %c0_14 = arith.constant 0 : index
    %c0_15 = arith.constant 0 : index
    %17 = vector.load %arg7[%c0_14, %c0_15] : memref<64x32xf32, #tpu.memory_space<vmem>>, vector<64x32xf32>
    %c0_16 = arith.constant 0 : index
    %c0_17 = arith.constant 0 : index
    %18 = vector.load %arg8[%c0_16, %c0_17] : memref<1x32xf32, #tpu.memory_space<vmem>>, vector<1x32xf32>
    %cst_18 = arith.constant dense<0.000000e+00> : vector<8x32xf32>
    %19 = tpu.matmul %16, %17, %cst_18 {dimension_numbers = #tpu.dot_dimension_numbers<[1], [0], [0], [1], [0, 0, 1, 1], [], []>} : vector<8x64xf32>, vector<64x32xf32>, vector<8x32xf32> -> vector<8x32xf32>
    %20 = vector.broadcast %18 : vector<1x32xf32> to vector<8x32xf32>
    %21 = arith.addf %19, %20 : vector<8x32xf32>
    %cst_19 = arith.constant 0.000000e+00 : f32
    %22 = vector.broadcast %cst_19 : f32 to vector<8x32xf32>
    %23 = arith.maximumf %21, %22 : vector<8x32xf32>
    %c0_20 = arith.constant 0 : index
    %c0_21 = arith.constant 0 : index
    %24 = vector.load %arg9[%c0_20, %c0_21] : memref<32x4xf32, #tpu.memory_space<vmem>>, vector<32x4xf32>
    %c0_22 = arith.constant 0 : index
    %c0_23 = arith.constant 0 : index
    %25 = vector.load %arg10[%c0_22, %c0_23] : memref<1x4xf32, #tpu.memory_space<vmem>>, vector<1x4xf32>
    %cst_24 = arith.constant dense<0.000000e+00> : vector<8x4xf32>
    %26 = tpu.matmul %23, %24, %cst_24 {dimension_numbers = #tpu.dot_dimension_numbers<[1], [0], [0], [1], [0, 0, 1, 1], [], []>} : vector<8x32xf32>, vector<32x4xf32>, vector<8x4xf32> -> vector<8x4xf32>
    %27 = vector.broadcast %25 : vector<1x4xf32> to vector<8x4xf32>
    %28 = arith.addf %26, %27 : vector<8x4xf32>
    %c0_25 = arith.constant 0 : index
    %c0_26 = arith.constant 0 : index
    %29 = vector.load %arg11[%c0_25, %c0_26] : memref<8x4xf32, #tpu.memory_space<vmem>>, vector<8x4xf32>
    tpu.vector_store %arg11[%c0_25, %c0_26], %28 {strides = array<i32>} : memref<8x4xf32, #tpu.memory_space<vmem>>, vector<8x4xf32>,
    return
  }
  func.func @transform_0(%arg0: i32) -> (i32, i32) {
    %c0_i32 = arith.constant 0 : i32
    %c0_i32_0 = arith.constant 0 : i32
    return %arg0, %c0_i32 : i32, i32
  }
  func.func @transform_1(%arg0: i32) -> (i32, i32) {
    %c0_i32 = arith.constant 0 : i32
    %c0_i32_0 = arith.constant 0 : i32
    %c0_i32_1 = arith.constant 0 : i32
    return %c0_i32, %c0_i32_0 : i32, i32
  }
  func.func @transform_2(%arg0: i32) -> (i32, i32) {
    %c0_i32 = arith.constant 0 : i32
    %c0_i32_0 = arith.constant 0 : i32
    %c0_i32_1 = arith.constant 0 : i32
    return %c0_i32, %c0_i32_0 : i32, i32
  }
  func.func @transform_3(%arg0: i32) -> (i32, i32) {
    %c0_i32 = arith.constant 0 : i32
    %c0_i32_0 = arith.constant 0 : i32
    %c0_i32_1 = arith.constant 0 : i32
    return %c0_i32, %c0_i32_0 : i32, i32
  }
  func.func @transform_4(%arg0: i32) -> (i32, i32) {
    %c0_i32 = arith.constant 0 : i32
    %c0_i32_0 = arith.constant 0 : i32
    %c0_i32_1 = arith.constant 0 : i32
    return %c0_i32, %c0_i32_0 : i32, i32
  }
  func.func @transform_5(%arg0: i32) -> (i32, i32) {
    %c0_i32 = arith.constant 0 : i32
    %c0_i32_0 = arith.constant 0 : i32
    %c0_i32_1 = arith.constant 0 : i32
    return %c0_i32, %c0_i32_0 : i32, i32
  }
  func.func @transform_6(%arg0: i32) -> (i32, i32) {
    %c0_i32 = arith.constant 0 : i32
    %c0_i32_0 = arith.constant 0 : i32
    %c0_i32_1 = arith.constant 0 : i32
    return %c0_i32, %c0_i32_0 : i32, i32
  }
  func.func @transform_7(%arg0: i32) -> (i32, i32) {
    %c0_i32 = arith.constant 0 : i32
    %c0_i32_0 = arith.constant 0 : i32
    %c0_i32_1 = arith.constant 0 : i32
    return %c0_i32, %c0_i32_0 : i32, i32
  }
  func.func @transform_8(%arg0: i32) -> (i32, i32) {
    %c0_i32 = arith.constant 0 : i32
    %c0_i32_0 = arith.constant 0 : i32
    %c0_i32_1 = arith.constant 0 : i32
    return %c0_i32, %c0_i32_0 : i32, i32
  }
  func.func @transform_9(%arg0: i32) -> (i32, i32) {
    %c0_i32 = arith.constant 0 : i32
    %c0_i32_0 = arith.constant 0 : i32
    %c0_i32_1 = arith.constant 0 : i32
    return %c0_i32, %c0_i32_0 : i32, i32
  }
  func.func @transform_10(%arg0: i32) -> (i32, i32) {
    %c0_i32 = arith.constant 0 : i32
    %c0_i32_0 = arith.constant 0 : i32
    return %arg0, %c0_i32 : i32, i32
  }
}

</mosaic_0001>

<bundles_post_ra>
// kernel: tpu_custom_call.1
= control target key start
LH: loop header
LB: loop body
LE: loop exit
PB: predicated region body
PF: predicated region fallthrough
CT: control target
= control target key end

     0   :  { %vm50_vm0 = vcmask 261120   ;;  %vm75_vm1 = vcmask 64512   ;;  %vm136_vm2 = vcmask 523264   ;;  %vm192_vm3 = vcmask 31744   ;;  %s348_s1 = inlined_call_operand.vmem [shape: f32[32,8], index: 1, kind: input, shape index: {}]   ;;  %s349_s3 = inlined_call_operand.vmem [shape: f32[32,64], index: 3, kind: input, shape index: {}]   ;;  %s350_s2 = inlined_call_operand.vmem [shape: f32[1,8], index: 2, kind: input, shape index: {}]   ;;  %s351_s0 = inlined_call_operand.vmem [shape: f32[8,32], index: 0, kind: input, shape index: {}]   ;;  %s352_s4 = inlined_call_operand.vmem [shape: f32[8,64], index: 4, kind: input, shape index: {}]   ;;  %s353_s6 = inlined_call_operand.vmem [shape: f32[64,32], index: 6, kind: input, shape index: {}]   ;;  %s354_s5 = inlined_call_operand.vmem [shape: f32[1,64], index: 5, kind: input, shape index: {}]   ;;  %s355_s7 = inlined_call_operand.vmem [shape: f32[1,32], index: 7, kind: input, shape index: {}]   ;;  %s356_s8 = inlined_call_operand.vmem [shape: f32[32,4], index: 8, kind: input, shape index: {}]   ;;  %s357_s9 = inlined_call_operand.vmem [shape: f32[1,4], index: 9, kind: input, shape index: {}]   ;;  %s358_s10 = inlined_call_operand.vmem [shape: f32[8,4], index: 10, kind: output, shape index: {}]  }
   0x1   :  { %v39_v0 = vld [vmem:[%s348_s1 + $0x18] sm:$0xff]  ;;  %v38_v1 = vld [vmem:[%s348_s1 + $0x10] sm:$0xff]  ;;  %v37_v3 = vld [vmem:[%s348_s1 + $0x8] sm:$0xff] }
   0x2   :  { %66 = vmatpush.msra.mxu0 %v39_v0  ;;  %v44_v2 = vld [vmem:[%s349_s3 + $0x18] sm:$0xff]  ;;  %v43_v4 = vld [vmem:[%s349_s3 + $0x10] sm:$0xff]  ;;  %v36_v5 = vld [vmem:[%s348_s1] sm:$0xff] }
   0x3   :  { %111 = vmatpush.msra.mxu2 %v44_v2  ;;  %v35_v6 = vld [vmem:[%s351_s0] sm:$0xff]  ;;  %v42_v7 = vld [vmem:[%s349_s3 + $0x8] sm:$0xff]  ;;  %v131_v10 = vld [vmem:[%s353_s6 + $0x38] sm:$0xff] }
   0x4   :  { %67 = vmatpush.msra.mxu0 %v38_v1  ;;  %v41_v8 = vld [vmem:[%s349_s3] sm:$0xff]  ;;  %v130_v11 = vld [vmem:[%s353_s6 + $0x30] sm:$0xff]  ;;  %148 = vmatpush.msra.mxu3 %v131_v10  ;;  %v129_v12 = vld [vmem:[%s353_s6 + $0x28] sm:$0xff] }
   0x5   :  { %112 = vmatpush.msra.mxu2 %v43_v4  ;;  %v45_v9 = vld [vmem:[%s352_s4] sm:$0xff]  ;;  %v127_v18 = vld [vmem:[%s353_s6 + $0x18] sm:$0xff]  ;;  %v126_v19 = vld [vmem:[%s353_s6 + $0x10] sm:$0xff] }
   0x6   :  { %68 = vmatpush.msra.mxu0 %v37_v3  ;;  %94 = vmatpush.msra.mxu1 %v45_v9  ;;  %v128_v13 = vld [vmem:[%s353_s6 + $0x20] sm:$0xff]  ;;  %v125_v20 = vld [vmem:[%s353_s6 + $0x8] sm:$0xff]  ;;  %v164_v22 = vld [vmem:[%s356_s8 + $0x18] sm:$0xff] }
   0x7   :  { %113 = vmatpush.msra.mxu2 %v42_v7  ;;  %149 = vmatpush.msra.mxu3 %v130_v11  ;;  %v203_v14 = vld [vmem:[%s350_s2] ss:$0 sm:$0xff]  ;;  %v163_v23 = vld [vmem:[%s356_s8 + $0x10] sm:$0xff]  ;;  %v162_v30 = vld [vmem:[%s356_s8 + $0x8] sm:$0xff] }
   0x8   :  { %69 = vmatpush.msra.mxu0 %v36_v5  ;;  %v124_v21 = vld [vmem:[%s353_s6] sm:$0xff]  ;;  %184 = vmatpush.msrb.mxu1 %v164_v22 }
   0x9   :  { %198 = vmatmul.msk.f32.vlgmr.msra.gmra.mxu0 %vm50_vm0, %v35_v6  ;;  %114 = vmatpush.msra.mxu2 %v41_v8  ;;  %v204_v25 = vld [vmem:[%s354_s5] ss:$0 sm:$0xff] }
   0xa   :  { %200 = vmatmul.msk.f32.vlgmr.msra.gmra.mxu2 %vm50_vm0, %v35_v6  ;;  %150 = vmatpush.msra.mxu3 %v129_v12  ;;  %v161_v31 = vld [vmem:[%s356_s8] sm:$0xff] }
   0xb   :  { %185 = vmatpush.msrb.mxu1 %v163_v23  ;;  %v205_v32 = vld [vmem:[%s355_s7] ss:$0 sm:$0xff] }
   0xc   :  { %151 = vmatpush.msra.mxu3 %v128_v13  ;;  %v206_v36 = vld [vmem:[%s357_s9] ss:$0 sm:$0xff] }
   0xd   :  { %186 = vmatpush.msrb.mxu1 %v162_v30 }
   0xe   :  { %152 = vmatpush.msra.mxu3 %v127_v18 }
   0xf   :  { %187 = vmatpush.msrb.mxu1 %v161_v31 }
  0x10   :  { %153 = vmatpush.msra.mxu3 %v126_v19 }
  0x12   :  { %154 = vmatpush.msra.mxu3 %v125_v20 }
  0x14   :  { %155 = vmatpush.msra.mxu3 %v124_v21 }
  0x86   :  { %v71_v15 = vpop.f32.mrf.mxu0 }
  0x87   :  { %v72_v16 = vadd.f32 %v203_v14, %v71_v15 }
  0x89   :  { %207 = vtanh.f32 %v72_v16 }
  0x8d   :  { %v116_v24 = vpop.f32.mrf.mxu2 }
  0x8f   :  { %v208_v17 = vpop.eup %207 }
  0x90   :  { %199 = vmatmul.msk.f32.vlgmr.msra.gmra.mxu1 %vm75_vm1, %v208_v17 }
 0x10d   :  { %v96_v26 = vpop.f32.mrf.mxu1 }
 0x10e   :  { %v117_v27 = vadd.f32 %v116_v24, %v96_v26 }
 0x110   :  { %v122_v28 = vadd.f32 %v204_v25, %v117_v27 }
 0x112   :  { %v123_v29 = vmax.f32 %v122_v28, 0.0 }
 0x114   :  { %201 = vmatmul.msk.f32.vlgmr.msra.gmra.mxu3 %vm136_vm2, %v123_v29 }
 0x197   :  { %v157_v33 = vpop.f32.mrf.mxu3 }
 0x198   :  { %v158_v34 = vadd.f32 %v205_v32, %v157_v33 }
 0x19a   :  { %v160_v35 = vmax.f32 %v158_v34, 0.0 }
 0x19c   :  { %202 = vmatmul.msk.f32.vlgmr.msrb.gmra.mxu1 %vm50_vm0, %v160_v35 }
 0x219   :  { %v189_v37 = vpop.f32.mrf.mxu1 }
 0x21a   :  { %v190_v38 = vadd.f32 %v206_v36, %v189_v37 }
 0x21c   :  { %193 = vst.msk [vmem:[%s358_s10] sm:$0xff] %vm192_vm3, %v190_v38 }

</bundles_post_ra>
